<compile_context>
chip_gen: v7x
topology: tpu7x:2x2x1
jax: 0.10.0
libtpu: 0.0.40
codegen_flags: <defaults>
</compile_context>

<pallas_src>
import math

import jax
import jax.numpy as jnp
from jax.experimental import pallas as pl
from jax.experimental.pallas import tpu as pltpu


# --------------------------------------------------------------------------
# Pallas kernel: stacked softmax/log_softmax + M x M pairwise KLDivLoss('mean')
# --------------------------------------------------------------------------
def klssa_kernel(x_ref, kl_ref):
    """x_ref: (M, B, C) f32 in VMEM.  kl_ref: (M, M) f32 in SMEM."""
    x = x_ref[...]                                       # (M, B, C)

    # Numerically-stable softmax / log_softmax over the class dim (dim=1 of
    # each (B, C) modality tensor in the PyTorch module == last dim here),
    # vectorized over the whole modality stack.
    x_max = jnp.max(x, axis=-1, keepdims=True)
    shifted = x - x_max
    ex = jnp.exp(shifted)
    denom = jnp.sum(ex, axis=-1, keepdims=True)
    log_probs = shifted - jnp.log(denom)                 # F.log_softmax(x, dim=1)
    probs = ex / denom                                   # F.softmax(x, dim=1)

    M, B, C = x_ref.shape
    inv_numel = 1.0 / (B * C)                            # nn.KLDivLoss() default 'mean'

    # M = number of modalities (tiny) -> static unroll of M*M cheap full
    # reductions; each KL entry is a scalar stored straight into SMEM.
    for m in range(M):                                   # input  = log_probs[m]
        lpm = log_probs[m]
        for n in range(M):                               # target = probs[n]
            pn = probs[n]
            lpn = log_probs[n]
            kl_ref[m, n] = jnp.sum(pn * (lpn - lpm)) * inv_numel


def run_klssa_kernel(x_stack):
    m = x_stack.shape[0]
    return pl.pallas_call(
        klssa_kernel,
        out_shape=jax.ShapeDtypeStruct((m, m), jnp.float32),
        in_specs=[pl.BlockSpec(memory_space=pltpu.MemorySpace.VMEM)],
        out_specs=pl.BlockSpec(memory_space=pltpu.MemorySpace.SMEM),
    )(x_stack)


# --------------------------------------------------------------------------
# Host-side scalar regularizer (identical control flow to the PyTorch module)
# --------------------------------------------------------------------------
def _sigmoid(x):
    return 1.0 / (1.0 + math.exp(-x))


def _regularizer(loss1, loss2, beta=2.0, threshold=1e-5, method="exp"):
    d = loss1 - loss2
    if method == "exp":
        return beta * math.exp(d) - 1 if d > threshold else 0.0
    elif method == "switch":
        return d * _sigmoid(beta * d) if d > threshold else 0.0
    elif method == "identity":
        return beta * d if d > threshold else 0.0
    elif method == "multiply":
        return beta * math.exp(d) - 1 if d > threshold else 0.0
    elif method == "exp_in":
        return math.exp(beta * d) - 1 if d > threshold else 0.0
    elif method == "bi_exp":
        return beta * math.exp(d) - 1
    elif method == "bi_switch":
        return d * _sigmoid(beta * d)
    elif method == "bi_exp_in":
        return 2 * math.exp(beta * d) - 1 if d > threshold else 0.0
    elif method == "bibi_exp_in":
        return 2 * math.exp(beta * d) - 1
    elif method == "log":
        return math.log(beta * d + 1) if d > threshold else 0.0
    return 0.0


# --------------------------------------------------------------------------
# KLSSALoss.forward
# --------------------------------------------------------------------------
def klssa_loss_forward(dict_loss, dict_x, requirements, beta=2.0, lamda=0.1,
                       threshold=1e-5, reg_method="exp"):
    # Single stacked device input -> one DMA of the activations, one kernel.
    x_stack = jnp.stack([dict_x[r] for r in requirements], axis=0).astype(jnp.float32)
    kl = run_klssa_kernel(x_stack)                       # (M, M): kl[m, n] = KLDiv(log_p_m, p_n)

    ssaloss, total = {}, {}
    for i, m in enumerate(requirements):
        acc = 0.0
        for j, n in enumerate(requirements):
            focal = _regularizer(dict_loss[m], dict_loss[n], beta, threshold, reg_method)
            acc = acc + focal * kl[i, j]
        ssaloss[m] = acc
        total[m] = dict_loss[m] + lamda * acc
    return {"ssaloss": ssaloss, "total_loss": total}


if __name__ == "__main__":
    # Small synthetic config: 4 modalities, batch=2, 32 classes.
    requirements = ["rgb", "depth", "flow", "ir"]
    B, C = 2, 32

    key = jax.random.PRNGKey(0)
    keys = jax.random.split(key, len(requirements))
    dict_x = {r: jax.random.normal(keys[i], (B, C), dtype=jnp.float32)
              for i, r in enumerate(requirements)}
    dict_loss = {"rgb": 0.8, "depth": 0.6, "flow": 0.4, "ir": 0.9}

    # Silent sanity check of the kernel against a pure-JAX reference.
    x_stack = jnp.stack([dict_x[r] for r in requirements], axis=0)
    kl_kernel = run_klssa_kernel(x_stack)
    lp = jax.nn.log_softmax(x_stack, axis=-1)
    p = jax.nn.softmax(x_stack, axis=-1)
    kl_ref = jnp.mean(p[None, :] * (lp[None, :] - lp[:, None]), axis=(2, 3))
    assert float(jnp.max(jnp.abs(kl_kernel - kl_ref))) < 1e-4

    out = klssa_loss_forward(dict_loss, dict_x, requirements,
                             beta=2.0, lamda=0.1, threshold=1e-5,
                             reg_method="exp")

    jax.block_until_ready([out["total_loss"][r] for r in requirements])
    jax.block_until_ready([out["ssaloss"][r] for r in requirements])
    print("KERNEL_OK")
</pallas_src>

<mosaic_0001>
module attributes {stable_mosaic.version = 11 : i64} {
  func.func @klssa_kernel(%arg0: memref<4x2x32xf32, #tpu.memory_space<vmem>>, %arg1: memref<4x4xf32, #tpu.memory_space<smem>>) attributes {dimension_semantics = [], scalar_prefetch = 0 : i64, scratch_operands = 0 : i64, tpu.core_type = #tpu.core_type<tc>} {
    %c0 = arith.constant 0 : index
    %c0_0 = arith.constant 0 : index
    %c0_1 = arith.constant 0 : index
    %0 = vector.load %arg0[%c0, %c0_0, %c0_1] : memref<4x2x32xf32, #tpu.memory_space<vmem>>, vector<4x2x32xf32>
    %cst = arith.constant dense<0xFF800000> : vector<4x2xf32>
    %1 = vector.multi_reduction <maximumf>, %0, %cst [2] : vector<4x2x32xf32> to vector<4x2xf32>
    %2 = vector.shape_cast %1 : vector<4x2xf32> to vector<4x2x1xf32>
    %3 = vector.broadcast %2 : vector<4x2x1xf32> to vector<4x2x32xf32>
    %4 = arith.subf %0, %3 : vector<4x2x32xf32>
    %5 = math.exp %4 : vector<4x2x32xf32>
    %cst_2 = arith.constant dense<0.000000e+00> : vector<4x2xf32>
    %6 = vector.multi_reduction <add>, %5, %cst_2 [2] : vector<4x2x32xf32> to vector<4x2xf32>
    %7 = vector.shape_cast %6 : vector<4x2xf32> to vector<4x2x1xf32>
    %8 = math.log %7 : vector<4x2x1xf32>
    %9 = vector.broadcast %8 : vector<4x2x1xf32> to vector<4x2x32xf32>
    %10 = arith.subf %4, %9 : vector<4x2x32xf32>
    %11 = vector.broadcast %7 : vector<4x2x1xf32> to vector<4x2x32xf32>
    %12 = arith.divf %5, %11 : vector<4x2x32xf32>
    %13 = vector.extract_strided_slice %10 {offsets = [0, 0, 0], sizes = [1, 2, 32], strides = [1, 1, 1]} : vector<4x2x32xf32> to vector<1x2x32xf32>
    %14 = vector.shape_cast %13 : vector<1x2x32xf32> to vector<2x32xf32>
    %15 = vector.extract_strided_slice %12 {offsets = [0, 0, 0], sizes = [1, 2, 32], strides = [1, 1, 1]} : vector<4x2x32xf32> to vector<1x2x32xf32>
    %16 = vector.shape_cast %15 : vector<1x2x32xf32> to vector<2x32xf32>
    %17 = vector.extract_strided_slice %10 {offsets = [0, 0, 0], sizes = [1, 2, 32], strides = [1, 1, 1]} : vector<4x2x32xf32> to vector<1x2x32xf32>
    %18 = vector.shape_cast %17 : vector<1x2x32xf32> to vector<2x32xf32>
    %19 = arith.subf %18, %14 : vector<2x32xf32>
    %20 = arith.mulf %16, %19 : vector<2x32xf32>
    %21 = vector.shape_cast %20 : vector<2x32xf32> to vector<1x2x32xf32>
    %cst_3 = arith.constant dense<0.000000e+00> : vector<1xf32>
    %22 = vector.multi_reduction <add>, %21, %cst_3 [1, 2] : vector<1x2x32xf32> to vector<1xf32>
    %23 = vector.shape_cast %22 : vector<1xf32> to vector<1x1x1xf32>
    %24 = vector.extract %23[0, 0, 0] : f32 from vector<1x1x1xf32>
    %cst_4 = arith.constant 1.562500e-02 : f32
    %25 = arith.mulf %24, %cst_4 : f32
    %c0_5 = arith.constant 0 : index
    %c0_6 = arith.constant 0 : index
    %26 = memref.load %arg1[%c0_5, %c0_6] : memref<4x4xf32, #tpu.memory_space<smem>>
    memref.store %25, %arg1[%c0_5, %c0_6] : memref<4x4xf32, #tpu.memory_space<smem>>
    %27 = vector.extract_strided_slice %12 {offsets = [1, 0, 0], sizes = [1, 2, 32], strides = [1, 1, 1]} : vector<4x2x32xf32> to vector<1x2x32xf32>
    %28 = vector.shape_cast %27 : vector<1x2x32xf32> to vector<2x32xf32>
    %29 = vector.extract_strided_slice %10 {offsets = [1, 0, 0], sizes = [1, 2, 32], strides = [1, 1, 1]} : vector<4x2x32xf32> to vector<1x2x32xf32>
    %30 = vector.shape_cast %29 : vector<1x2x32xf32> to vector<2x32xf32>
    %31 = arith.subf %30, %14 : vector<2x32xf32>
    %32 = arith.mulf %28, %31 : vector<2x32xf32>
    %33 = vector.shape_cast %32 : vector<2x32xf32> to vector<1x2x32xf32>
    %cst_7 = arith.constant dense<0.000000e+00> : vector<1xf32>
    %34 = vector.multi_reduction <add>, %33, %cst_7 [1, 2] : vector<1x2x32xf32> to vector<1xf32>
    %35 = vector.shape_cast %34 : vector<1xf32> to vector<1x1x1xf32>
    %36 = vector.extract %35[0, 0, 0] : f32 from vector<1x1x1xf32>
    %cst_8 = arith.constant 1.562500e-02 : f32
    %37 = arith.mulf %36, %cst_8 : f32
    %c0_9 = arith.constant 0 : index
    %c1 = arith.constant 1 : index
    %38 = memref.load %arg1[%c0_9, %c1] : memref<4x4xf32, #tpu.memory_space<smem>>
    memref.store %37, %arg1[%c0_9, %c1] : memref<4x4xf32, #tpu.memory_space<smem>>
    %39 = vector.extract_strided_slice %12 {offsets = [2, 0, 0], sizes = [1, 2, 32], strides = [1, 1, 1]} : vector<4x2x32xf32> to vector<1x2x32xf32>
    %40 = vector.shape_cast %39 : vector<1x2x32xf32> to vector<2x32xf32>
    %41 = vector.extract_strided_slice %10 {offsets = [2, 0, 0], sizes = [1, 2, 32], strides = [1, 1, 1]} : vector<4x2x32xf32> to vector<1x2x32xf32>
    %42 = vector.shape_cast %41 : vector<1x2x32xf32> to vector<2x32xf32>
    %43 = arith.subf %42, %14 : vector<2x32xf32>
    %44 = arith.mulf %40, %43 : vector<2x32xf32>
    %45 = vector.shape_cast %44 : vector<2x32xf32> to vector<1x2x32xf32>
    %cst_10 = arith.constant dense<0.000000e+00> : vector<1xf32>
    %46 = vector.multi_reduction <add>, %45, %cst_10 [1, 2] : vector<1x2x32xf32> to vector<1xf32>
    %47 = vector.shape_cast %46 : vector<1xf32> to vector<1x1x1xf32>
    %48 = vector.extract %47[0, 0, 0] : f32 from vector<1x1x1xf32>
    %cst_11 = arith.constant 1.562500e-02 : f32
    %49 = arith.mulf %48, %cst_11 : f32
    %c0_12 = arith.constant 0 : index
    %c2 = arith.constant 2 : index
    %50 = memref.load %arg1[%c0_12, %c2] : memref<4x4xf32, #tpu.memory_space<smem>>
    memref.store %49, %arg1[%c0_12, %c2] : memref<4x4xf32, #tpu.memory_space<smem>>
    %51 = vector.extract_strided_slice %12 {offsets = [3, 0, 0], sizes = [1, 2, 32], strides = [1, 1, 1]} : vector<4x2x32xf32> to vector<1x2x32xf32>
    %52 = vector.shape_cast %51 : vector<1x2x32xf32> to vector<2x32xf32>
    %53 = vector.extract_strided_slice %10 {offsets = [3, 0, 0], sizes = [1, 2, 32], strides = [1, 1, 1]} : vector<4x2x32xf32> to vector<1x2x32xf32>
    %54 = vector.shape_cast %53 : vector<1x2x32xf32> to vector<2x32xf32>
    %55 = arith.subf %54, %14 : vector<2x32xf32>
    %56 = arith.mulf %52, %55 : vector<2x32xf32>
    %57 = vector.shape_cast %56 : vector<2x32xf32> to vector<1x2x32xf32>
    %cst_13 = arith.constant dense<0.000000e+00> : vector<1xf32>
    %58 = vector.multi_reduction <add>, %57, %cst_13 [1, 2] : vector<1x2x32xf32> to vector<1xf32>
    %59 = vector.shape_cast %58 : vector<1xf32> to vector<1x1x1xf32>
    %60 = vector.extract %59[0, 0, 0] : f32 from vector<1x1x1xf32>
    %cst_14 = arith.constant 1.562500e-02 : f32
    %61 = arith.mulf %60, %cst_14 : f32
    %c0_15 = arith.constant 0 : index
    %c3 = arith.constant 3 : index
    %62 = memref.load %arg1[%c0_15, %c3] : memref<4x4xf32, #tpu.memory_space<smem>>
    memref.store %61, %arg1[%c0_15, %c3] : memref<4x4xf32, #tpu.memory_space<smem>>
    %63 = vector.extract_strided_slice %10 {offsets = [1, 0, 0], sizes = [1, 2, 32], strides = [1, 1, 1]} : vector<4x2x32xf32> to vector<1x2x32xf32>
    %64 = vector.shape_cast %63 : vector<1x2x32xf32> to vector<2x32xf32>
    %65 = vector.extract_strided_slice %12 {offsets = [0, 0, 0], sizes = [1, 2, 32], strides = [1, 1, 1]} : vector<4x2x32xf32> to vector<1x2x32xf32>
    %66 = vector.shape_cast %65 : vector<1x2x32xf32> to vector<2x32xf32>
    %67 = vector.extract_strided_slice %10 {offsets = [0, 0, 0], sizes = [1, 2, 32], strides = [1, 1, 1]} : vector<4x2x32xf32> to vector<1x2x32xf32>
    %68 = vector.shape_cast %67 : vector<1x2x32xf32> to vector<2x32xf32>
    %69 = arith.subf %68, %64 : vector<2x32xf32>
    %70 = arith.mulf %66, %69 : vector<2x32xf32>
    %71 = vector.shape_cast %70 : vector<2x32xf32> to vector<1x2x32xf32>
    %cst_16 = arith.constant dense<0.000000e+00> : vector<1xf32>
    %72 = vector.multi_reduction <add>, %71, %cst_16 [1, 2] : vector<1x2x32xf32> to vector<1xf32>
    %73 = vector.shape_cast %72 : vector<1xf32> to vector<1x1x1xf32>
    %74 = vector.extract %73[0, 0, 0] : f32 from vector<1x1x1xf32>
    %cst_17 = arith.constant 1.562500e-02 : f32
    %75 = arith.mulf %74, %cst_17 : f32
    %c1_18 = arith.constant 1 : index
    %c0_19 = arith.constant 0 : index
    %76 = memref.load %arg1[%c1_18, %c0_19] : memref<4x4xf32, #tpu.memory_space<smem>>
    memref.store %75, %arg1[%c1_18, %c0_19] : memref<4x4xf32, #tpu.memory_space<smem>>
    %77 = vector.extract_strided_slice %12 {offsets = [1, 0, 0], sizes = [1, 2, 32], strides = [1, 1, 1]} : vector<4x2x32xf32> to vector<1x2x32xf32>
    %78 = vector.shape_cast %77 : vector<1x2x32xf32> to vector<2x32xf32>
    %79 = vector.extract_strided_slice %10 {offsets = [1, 0, 0], sizes = [1, 2, 32], strides = [1, 1, 1]} : vector<4x2x32xf32> to vector<1x2x32xf32>
    %80 = vector.shape_cast %79 : vector<1x2x32xf32> to vector<2x32xf32>
    %81 = arith.subf %80, %64 : vector<2x32xf32>
    %82 = arith.mulf %78, %81 : vector<2x32xf32>
    %83 = vector.shape_cast %82 : vector<2x32xf32> to vector<1x2x32xf32>
    %cst_20 = arith.constant dense<0.000000e+00> : vector<1xf32>
    %84 = vector.multi_reduction <add>, %83, %cst_20 [1, 2] : vector<1x2x32xf32> to vector<1xf32>
    %85 = vector.shape_cast %84 : vector<1xf32> to vector<1x1x1xf32>
    %86 = vector.extract %85[0, 0, 0] : f32 from vector<1x1x1xf32>
    %cst_21 = arith.constant 1.562500e-02 : f32
    %87 = arith.mulf %86, %cst_21 : f32
    %c1_22 = arith.constant 1 : index
    %c1_23 = arith.constant 1 : index
    %88 = memref.load %arg1[%c1_22, %c1_23] : memref<4x4xf32, #tpu.memory_space<smem>>
    memref.store %87, %arg1[%c1_22, %c1_23] : memref<4x4xf32, #tpu.memory_space<smem>>
    %89 = vector.extract_strided_slice %12 {offsets = [2, 0, 0], sizes = [1, 2, 32], strides = [1, 1, 1]} : vector<4x2x32xf32> to vector<1x2x32xf32>
    %90 = vector.shape_cast %89 : vector<1x2x32xf32> to vector<2x32xf32>
    %91 = vector.extract_strided_slice %10 {offsets = [2, 0, 0], sizes = [1, 2, 32], strides = [1, 1, 1]} : vector<4x2x32xf32> to vector<1x2x32xf32>
    %92 = vector.shape_cast %91 : vector<1x2x32xf32> to vector<2x32xf32>
    %93 = arith.subf %92, %64 : vector<2x32xf32>
    %94 = arith.mulf %90, %93 : vector<2x32xf32>
    %95 = vector.shape_cast %94 : vector<2x32xf32> to vector<1x2x32xf32>
    %cst_24 = arith.constant dense<0.000000e+00> : vector<1xf32>
    %96 = vector.multi_reduction <add>, %95, %cst_24 [1, 2] : vector<1x2x32xf32> to vector<1xf32>
    %97 = vector.shape_cast %96 : vector<1xf32> to vector<1x1x1xf32>
    %98 = vector.extract %97[0, 0, 0] : f32 from vector<1x1x1xf32>
    %cst_25 = arith.constant 1.562500e-02 : f32
    %99 = arith.mulf %98, %cst_25 : f32
    %c1_26 = arith.constant 1 : index
    %c2_27 = arith.constant 2 : index
    %100 = memref.load %arg1[%c1_26, %c2_27] : memref<4x4xf32, #tpu.memory_space<smem>>
    memref.store %99, %arg1[%c1_26, %c2_27] : memref<4x4xf32, #tpu.memory_space<smem>>
    %101 = vector.extract_strided_slice %12 {offsets = [3, 0, 0], sizes = [1, 2, 32], strides = [1, 1, 1]} : vector<4x2x32xf32> to vector<1x2x32xf32>
    %102 = vector.shape_cast %101 : vector<1x2x32xf32> to vector<2x32xf32>
    %103 = vector.extract_strided_slice %10 {offsets = [3, 0, 0], sizes = [1, 2, 32], strides = [1, 1, 1]} : vector<4x2x32xf32> to vector<1x2x32xf32>
    %104 = vector.shape_cast %103 : vector<1x2x32xf32> to vector<2x32xf32>
    %105 = arith.subf %104, %64 : vector<2x32xf32>
    %106 = arith.mulf %102, %105 : vector<2x32xf32>
    %107 = vector.shape_cast %106 : vector<2x32xf32> to vector<1x2x32xf32>
    %cst_28 = arith.constant dense<0.000000e+00> : vector<1xf32>
    %108 = vector.multi_reduction <add>, %107, %cst_28 [1, 2] : vector<1x2x32xf32> to vector<1xf32>
    %109 = vector.shape_cast %108 : vector<1xf32> to vector<1x1x1xf32>
    %110 = vector.extract %109[0, 0, 0] : f32 from vector<1x1x1xf32>
    %cst_29 = arith.constant 1.562500e-02 : f32
    %111 = arith.mulf %110, %cst_29 : f32
    %c1_30 = arith.constant 1 : index
    %c3_31 = arith.constant 3 : index
    %112 = memref.load %arg1[%c1_30, %c3_31] : memref<4x4xf32, #tpu.memory_space<smem>>
    memref.store %111, %arg1[%c1_30, %c3_31] : memref<4x4xf32, #tpu.memory_space<smem>>
    %113 = vector.extract_strided_slice %10 {offsets = [2, 0, 0], sizes = [1, 2, 32], strides = [1, 1, 1]} : vector<4x2x32xf32> to vector<1x2x32xf32>
    %114 = vector.shape_cast %113 : vector<1x2x32xf32> to vector<2x32xf32>
    %115 = vector.extract_strided_slice %12 {offsets = [0, 0, 0], sizes = [1, 2, 32], strides = [1, 1, 1]} : vector<4x2x32xf32> to vector<1x2x32xf32>
    %116 = vector.shape_cast %115 : vector<1x2x32xf32> to vector<2x32xf32>
    %117 = vector.extract_strided_slice %10 {offsets = [0, 0, 0], sizes = [1, 2, 32], strides = [1, 1, 1]} : vector<4x2x32xf32> to vector<1x2x32xf32>
    %118 = vector.shape_cast %117 : vector<1x2x32xf32> to vector<2x32xf32>
    %119 = arith.subf %118, %114 : vector<2x32xf32>
    %120 = arith.mulf %116, %119 : vector<2x32xf32>
    %121 = vector.shape_cast %120 : vector<2x32xf32> to vector<1x2x32xf32>
    %cst_32 = arith.constant dense<0.000000e+00> : vector<1xf32>
    %122 = vector.multi_reduction <add>, %121, %cst_32 [1, 2] : vector<1x2x32xf32> to vector<1xf32>
    %123 = vector.shape_cast %122 : vector<1xf32> to vector<1x1x1xf32>
    %124 = vector.extract %123[0, 0, 0] : f32 from vector<1x1x1xf32>
    %cst_33 = arith.constant 1.562500e-02 : f32
    %125 = arith.mulf %124, %cst_33 : f32
    %c2_34 = arith.constant 2 : index
    %c0_35 = arith.constant 0 : index
    %126 = memref.load %arg1[%c2_34, %c0_35] : memref<4x4xf32, #tpu.memory_space<smem>>
    memref.store %125, %arg1[%c2_34, %c0_35] : memref<4x4xf32, #tpu.memory_space<smem>>
    %127 = vector.extract_strided_slice %12 {offsets = [1, 0, 0], sizes = [1, 2, 32], strides = [1, 1, 1]} : vector<4x2x32xf32> to vector<1x2x32xf32>
    %128 = vector.shape_cast %127 : vector<1x2x32xf32> to vector<2x32xf32>
    %129 = vector.extract_strided_slice %10 {offsets = [1, 0, 0], sizes = [1, 2, 32], strides = [1, 1, 1]} : vector<4x2x32xf32> to vector<1x2x32xf32>
    %130 = vector.shape_cast %129 : vector<1x2x32xf32> to vector<2x32xf32>
    %131 = arith.subf %130, %114 : vector<2x32xf32>
    %132 = arith.mulf %128, %131 : vector<2x32xf32>
    %133 = vector.shape_cast %132 : vector<2x32xf32> to vector<1x2x32xf32>
    %cst_36 = arith.constant dense<0.000000e+00> : vector<1xf32>
    %134 = vector.multi_reduction <add>, %133, %cst_36 [1, 2] : vector<1x2x32xf32> to vector<1xf32>
    %135 = vector.shape_cast %134 : vector<1xf32> to vector<1x1x1xf32>
    %136 = vector.extract %135[0, 0, 0] : f32 from vector<1x1x1xf32>
    %cst_37 = arith.constant 1.562500e-02 : f32
    %137 = arith.mulf %136, %cst_37 : f32
    %c2_38 = arith.constant 2 : index
    %c1_39 = arith.constant 1 : index
    %138 = memref.load %arg1[%c2_38, %c1_39] : memref<4x4xf32, #tpu.memory_space<smem>>
    memref.store %137, %arg1[%c2_38, %c1_39] : memref<4x4xf32, #tpu.memory_space<smem>>
    %139 = vector.extract_strided_slice %12 {offsets = [2, 0, 0], sizes = [1, 2, 32], strides = [1, 1, 1]} : vector<4x2x32xf32> to vector<1x2x32xf32>
    %140 = vector.shape_cast %139 : vector<1x2x32xf32> to vector<2x32xf32>
    %141 = vector.extract_strided_slice %10 {offsets = [2, 0, 0], sizes = [1, 2, 32], strides = [1, 1, 1]} : vector<4x2x32xf32> to vector<1x2x32xf32>
    %142 = vector.shape_cast %141 : vector<1x2x32xf32> to vector<2x32xf32>
    %143 = arith.subf %142, %114 : vector<2x32xf32>
    %144 = arith.mulf %140, %143 : vector<2x32xf32>
    %145 = vector.shape_cast %144 : vector<2x32xf32> to vector<1x2x32xf32>
    %cst_40 = arith.constant dense<0.000000e+00> : vector<1xf32>
    %146 = vector.multi_reduction <add>, %145, %cst_40 [1, 2] : vector<1x2x32xf32> to vector<1xf32>
    %147 = vector.shape_cast %146 : vector<1xf32> to vector<1x1x1xf32>
    %148 = vector.extract %147[0, 0, 0] : f32 from vector<1x1x1xf32>
    %cst_41 = arith.constant 1.562500e-02 : f32
    %149 = arith.mulf %148, %cst_41 : f32
    %c2_42 = arith.constant 2 : index
    %c2_43 = arith.constant 2 : index
    %150 = memref.load %arg1[%c2_42, %c2_43] : memref<4x4xf32, #tpu.memory_space<smem>>
    memref.store %149, %arg1[%c2_42, %c2_43] : memref<4x4xf32, #tpu.memory_space<smem>>
    %151 = vector.extract_strided_slice %12 {offsets = [3, 0, 0], sizes = [1, 2, 32], strides = [1, 1, 1]} : vector<4x2x32xf32> to vector<1x2x32xf32>
    %152 = vector.shape_cast %151 : vector<1x2x32xf32> to vector<2x32xf32>
    %153 = vector.extract_strided_slice %10 {offsets = [3, 0, 0], sizes = [1, 2, 32], strides = [1, 1, 1]} : vector<4x2x32xf32> to vector<1x2x32xf32>
    %154 = vector.shape_cast %153 : vector<1x2x32xf32> to vector<2x32xf32>
    %155 = arith.subf %154, %114 : vector<2x32xf32>
    %156 = arith.mulf %152, %155 : vector<2x32xf32>
    %157 = vector.shape_cast %156 : vector<2x32xf32> to vector<1x2x32xf32>
    %cst_44 = arith.constant dense<0.000000e+00> : vector<1xf32>
    %158 = vector.multi_reduction <add>, %157, %cst_44 [1, 2] : vector<1x2x32xf32> to vector<1xf32>
    %159 = vector.shape_cast %158 : vector<1xf32> to vector<1x1x1xf32>
    %160 = vector.extract %159[0, 0, 0] : f32 from vector<1x1x1xf32>
    %cst_45 = arith.constant 1.562500e-02 : f32
    %161 = arith.mulf %160, %cst_45 : f32
    %c2_46 = arith.constant 2 : index
    %c3_47 = arith.constant 3 : index
    %162 = memref.load %arg1[%c2_46, %c3_47] : memref<4x4xf32, #tpu.memory_space<smem>>
    memref.store %161, %arg1[%c2_46, %c3_47] : memref<4x4xf32, #tpu.memory_space<smem>>
    %163 = vector.extract_strided_slice %10 {offsets = [3, 0, 0], sizes = [1, 2, 32], strides = [1, 1, 1]} : vector<4x2x32xf32> to vector<1x2x32xf32>
    %164 = vector.shape_cast %163 : vector<1x2x32xf32> to vector<2x32xf32>
    %165 = vector.extract_strided_slice %12 {offsets = [0, 0, 0], sizes = [1, 2, 32], strides = [1, 1, 1]} : vector<4x2x32xf32> to vector<1x2x32xf32>
    %166 = vector.shape_cast %165 : vector<1x2x32xf32> to vector<2x32xf32>
    %167 = vector.extract_strided_slice %10 {offsets = [0, 0, 0], sizes = [1, 2, 32], strides = [1, 1, 1]} : vector<4x2x32xf32> to vector<1x2x32xf32>
    %168 = vector.shape_cast %167 : vector<1x2x32xf32> to vector<2x32xf32>
    %169 = arith.subf %168, %164 : vector<2x32xf32>
    %170 = arith.mulf %166, %169 : vector<2x32xf32>
    %171 = vector.shape_cast %170 : vector<2x32xf32> to vector<1x2x32xf32>
    %cst_48 = arith.constant dense<0.000000e+00> : vector<1xf32>
    %172 = vector.multi_reduction <add>, %171, %cst_48 [1, 2] : vector<1x2x32xf32> to vector<1xf32>
    %173 = vector.shape_cast %172 : vector<1xf32> to vector<1x1x1xf32>
    %174 = vector.extract %173[0, 0, 0] : f32 from vector<1x1x1xf32>
    %cst_49 = arith.constant 1.562500e-02 : f32
    %175 = arith.mulf %174, %cst_49 : f32
    %c3_50 = arith.constant 3 : index
    %c0_51 = arith.constant 0 : index
    %176 = memref.load %arg1[%c3_50, %c0_51] : memref<4x4xf32, #tpu.memory_space<smem>>
    memref.store %175, %arg1[%c3_50, %c0_51] : memref<4x4xf32, #tpu.memory_space<smem>>
    %177 = vector.extract_strided_slice %12 {offsets = [1, 0, 0], sizes = [1, 2, 32], strides = [1, 1, 1]} : vector<4x2x32xf32> to vector<1x2x32xf32>
    %178 = vector.shape_cast %177 : vector<1x2x32xf32> to vector<2x32xf32>
    %179 = vector.extract_strided_slice %10 {offsets = [1, 0, 0], sizes = [1, 2, 32], strides = [1, 1, 1]} : vector<4x2x32xf32> to vector<1x2x32xf32>
    %180 = vector.shape_cast %179 : vector<1x2x32xf32> to vector<2x32xf32>
    %181 = arith.subf %180, %164 : vector<2x32xf32>
    %182 = arith.mulf %178, %181 : vector<2x32xf32>
    %183 = vector.shape_cast %182 : vector<2x32xf32> to vector<1x2x32xf32>
    %cst_52 = arith.constant dense<0.000000e+00> : vector<1xf32>
    %184 = vector.multi_reduction <add>, %183, %cst_52 [1, 2] : vector<1x2x32xf32> to vector<1xf32>
    %185 = vector.shape_cast %184 : vector<1xf32> to vector<1x1x1xf32>
    %186 = vector.extract %185[0, 0, 0] : f32 from vector<1x1x1xf32>
    %cst_53 = arith.constant 1.562500e-02 : f32
    %187 = arith.mulf %186, %cst_53 : f32
    %c3_54 = arith.constant 3 : index
    %c1_55 = arith.constant 1 : index
    %188 = memref.load %arg1[%c3_54, %c1_55] : memref<4x4xf32, #tpu.memory_space<smem>>
    memref.store %187, %arg1[%c3_54, %c1_55] : memref<4x4xf32, #tpu.memory_space<smem>>
    %189 = vector.extract_strided_slice %12 {offsets = [2, 0, 0], sizes = [1, 2, 32], strides = [1, 1, 1]} : vector<4x2x32xf32> to vector<1x2x32xf32>
    %190 = vector.shape_cast %189 : vector<1x2x32xf32> to vector<2x32xf32>
    %191 = vector.extract_strided_slice %10 {offsets = [2, 0, 0], sizes = [1, 2, 32], strides = [1, 1, 1]} : vector<4x2x32xf32> to vector<1x2x32xf32>
    %192 = vector.shape_cast %191 : vector<1x2x32xf32> to vector<2x32xf32>
    %193 = arith.subf %192, %164 : vector<2x32xf32>
    %194 = arith.mulf %190, %193 : vector<2x32xf32>
    %195 = vector.shape_cast %194 : vector<2x32xf32> to vector<1x2x32xf32>
    %cst_56 = arith.constant dense<0.000000e+00> : vector<1xf32>
    %196 = vector.multi_reduction <add>, %195, %cst_56 [1, 2] : vector<1x2x32xf32> to vector<1xf32>
    %197 = vector.shape_cast %196 : vector<1xf32> to vector<1x1x1xf32>
    %198 = vector.extract %197[0, 0, 0] : f32 from vector<1x1x1xf32>
    %cst_57 = arith.constant 1.562500e-02 : f32
    %199 = arith.mulf %198, %cst_57 : f32
    %c3_58 = arith.constant 3 : index
    %c2_59 = arith.constant 2 : index
    %200 = memref.load %arg1[%c3_58, %c2_59] : memref<4x4xf32, #tpu.memory_space<smem>>
    memref.store %199, %arg1[%c3_58, %c2_59] : memref<4x4xf32, #tpu.memory_space<smem>>
    %201 = vector.extract_strided_slice %12 {offsets = [3, 0, 0], sizes = [1, 2, 32], strides = [1, 1, 1]} : vector<4x2x32xf32> to vector<1x2x32xf32>
    %202 = vector.shape_cast %201 : vector<1x2x32xf32> to vector<2x32xf32>
    %203 = vector.extract_strided_slice %10 {offsets = [3, 0, 0], sizes = [1, 2, 32], strides = [1, 1, 1]} : vector<4x2x32xf32> to vector<1x2x32xf32>
    %204 = vector.shape_cast %203 : vector<1x2x32xf32> to vector<2x32xf32>
    %205 = arith.subf %204, %164 : vector<2x32xf32>
    %206 = arith.mulf %202, %205 : vector<2x32xf32>
    %207 = vector.shape_cast %206 : vector<2x32xf32> to vector<1x2x32xf32>
    %cst_60 = arith.constant dense<0.000000e+00> : vector<1xf32>
    %208 = vector.multi_reduction <add>, %207, %cst_60 [1, 2] : vector<1x2x32xf32> to vector<1xf32>
    %209 = vector.shape_cast %208 : vector<1xf32> to vector<1x1x1xf32>
    %210 = vector.extract %209[0, 0, 0] : f32 from vector<1x1x1xf32>
    %cst_61 = arith.constant 1.562500e-02 : f32
    %211 = arith.mulf %210, %cst_61 : f32
    %c3_62 = arith.constant 3 : index
    %c3_63 = arith.constant 3 : index
    %212 = memref.load %arg1[%c3_62, %c3_63] : memref<4x4xf32, #tpu.memory_space<smem>>
    memref.store %211, %arg1[%c3_62, %c3_63] : memref<4x4xf32, #tpu.memory_space<smem>>
    return
  }
}

</mosaic_0001>

<bundles_post_ra>
// kernel: tpu_custom_call.1
= control target key start
LH: loop header
LB: loop body
LE: loop exit
PB: predicated region body
PF: predicated region fallthrough
CT: control target
= control target key end

     0   :  { %6 = vsyncpa [#allocation3], 0  ;;  %s506_s0 = inlined_call_operand.hbm [shape: f32[4,2,32], index: 0, kind: input, shape index: {}]   ;;  %s507_s1 = inlined_call_operand.hbm [shape: f32[4,4], index: 1, kind: output, shape index: {}]  }
   0x1   :  { %7 = vsyncpa [#allocation4], 0  ;;  %s434_s6 = smov [#allocation2]   ;;  %s398_s10 = scalar_lea.hbm %s506_s0, 128 }
   0x2   :  { %s13_s7 = sshll.u32 %s434_s6, 4  ;;  %p399_p0 = scmp.ne.s32.totalorder %s506_s0, %s398_s10  ;;  %s14_s7 = int_to_ptr.vmem [resolvable:$true] %s13_s7 }
   0x3   :  { %p402_p1 = scmp.lt.u32.totalorder %s398_s10, %s506_s0 }
   0x5   :  { %p404_p2 = pnand %p402_p1, %p399_p0 }
   0x7   :  { %407 = shalt.err (!%p404_p2)
}
   0x8   :  { %s408_s15 = scalar_lea.vmem %s14_s7, 128  ;;  %p413_p4 = scmp.lt.s32.totalorder %s14_s7, %s14_s7 }
   0x9   :  { %p409_p3 = scmp.ne.s32.totalorder %s14_s7, %s408_s15  ;;  %p414_p5 = scmp.lt.s32.totalorder %s408_s15, %s408_s15 }
   0xb   :  { %p415_p6 = por %p414_p5, %p413_p4 }
   0xd   :  { %p416_p7 = pnand %p415_p6, %p409_p3 }
   0xf   :  { %419 = shalt.err (!%p416_p7)
}
  0x10   :  { %s435_s16 = smov 32   ;;  %s436_s17 = smov 2  }
  0x11   :  { %19 = dma.hbm_to_vmem [thread:$0]  %s506_s0, 128, %s14_s7, [#allocation3], %s435_s16, %s435_s16, %s436_s17  }
  0x12   :  { %430 = dma.done.wait [#allocation3], 128  }
  0x13   :  { %431 = vsyncadd [#allocation3], 4294967168  ;;  %vm27_vm0 = vcmask 254976   ;;  %v23_v0 = vld [vmem:[#allocation2] sm:$0x3] }
  0x14   :  { %v25_v1 = vld [vmem:[#allocation2 + $0x4] sm:$0x3]  ;;  %v24_v2 = vld [vmem:[#allocation2 + $0x2] sm:$0x3]  ;;  %v28_v3 = vsel %vm27_vm0, %v23_v0, -inf }
  0x15   :  { %v34_v4 = vsel %vm27_vm0, %v25_v1, -inf  ;;  %v26_v5 = vld [vmem:[#allocation2 + $0x6] sm:$0x3]  ;;  %29 = vmax.xlane.f32.xlu0 %v28_v3  ;;  %v31_v6 = vsel %vm27_vm0, %v24_v2, -inf }
  0x16   :  { %35 = vmax.xlane.f32.xlu1 %v34_v4  ;;  %v37_v7 = vsel %vm27_vm0, %v26_v5, -inf }
  0x19   :  { %32 = vmax.xlane.f32.xlu0 %v31_v6 }
  0x1a   :  { %38 = vmax.xlane.f32.xlu1 %v37_v7 }
  0xa2   :  { %v30_v8 = vpop.xlane.xlu0 %29 }
  0xa3   :  { %v36_v9 = vpop.xlane.xlu1 %35  ;;  %v40_v10 = vsub.f32 %v23_v0, %v30_v8 }
  0xa4   :  { %v42_v11 = vsub.f32 %v25_v1, %v36_v9 }
  0xa5   :  { %v44_v12 = vmul.f32 1.442695, %v40_v10 }
  0xa6   :  { %v48_v13 = vmul.f32 1.442695, %v42_v11  ;;  %v33_v14 = vpop.xlane.xlu0 %32 }
  0xa7   :  { %v39_v15 = vpop.xlane.xlu1 %38  ;;  %374 = vpow2.f32 %v44_v12  ;;  %v41_v16 = vsub.f32 %v24_v2, %v33_v14 }
  0xa8   :  { %v43_v17 = vsub.f32 %v26_v5, %v39_v15  ;;  %376 = vpow2.f32 %v48_v13 }
  0xa9   :  { %v46_v18 = vmul.f32 1.442695, %v41_v16 }
  0xaa   :  { %v50_v19 = vmul.f32 1.442695, %v43_v17 }
  0xab   :  { %378 = vpow2.f32 %v46_v18 }
  0xac   :  { %380 = vpow2.f32 %v50_v19 }
  0xb1   :  { %v375_v20 = vpop.eup %374 }
  0xb2   :  { %v377_v21 = vpop.eup %376  ;;  %v52_v22 = vsel %vm27_vm0, %v375_v20, 0.0 }
  0xb3   :  { %53 = vadd.xlane.f32.xlu0 %v52_v22  ;;  %v58_v23 = vsel %vm27_vm0, %v377_v21, 0.0 }
  0xb5   :  { %v379_v24 = vpop.eup %378 }
  0xb6   :  { %v381_v25 = vpop.eup %380  ;;  %v55_v26 = vsel %vm27_vm0, %v379_v24, 0.0 }
  0xb7   :  { %59 = vadd.xlane.f32.xlu0 %v58_v23  ;;  %56 = vadd.xlane.f32.xlu1 %v55_v26  ;;  %v61_v27 = vsel %vm27_vm0, %v381_v25, 0.0 }
  0xbb   :  { %62 = vadd.xlane.f32.xlu1 %v61_v27 }
 0x140   :  { %v54_v28 = vpop.xlane.xlu0 %53 }
 0x141   :  { %382 = vlog2.f32 %v54_v28 }
 0x142   :  { %384 = vrcp.f32 %v54_v28 }
 0x144   :  { %v57_v29 = vpop.xlane.xlu1 %56  ;;  %v60_v30 = vpop.xlane.xlu0 %59 }
 0x145   :  { %386 = vlog2.f32 %v57_v29 }
 0x146   :  { %388 = vrcp.f32 %v57_v29 }
 0x147   :  { %390 = vlog2.f32 %v60_v30 }
 0x148   :  { %392 = vrcp.f32 %v60_v30  ;;  %v63_v31 = vpop.xlane.xlu1 %62 }
 0x149   :  { %394 = vlog2.f32 %v63_v31 }
 0x14a   :  { %396 = vrcp.f32 %v63_v31 }
 0x14b   :  { %v383_v32 = vpop.eup %382 }
 0x14c   :  { %v65_v33 = vmul.f32 0.6931472, %v383_v32  ;;  %v385_v34 = vpop.eup %384 }
 0x14d   :  { %v77_v39 = vmul.f32 %v385_v34, %v375_v20 }
 0x14e   :  { %v468_v35 = vsub.f32 %v40_v10, %v65_v33 }
 0x14f   :  { %v387_v36 = vpop.eup %386 }
 0x150   :  { %v389_v37 = vpop.eup %388  ;;  %v67_v38 = vmul.f32 0.6931472, %v387_v36  ;;  %v84_v40 = vsub.f32 %v468_v35, %v468_v35 }
 0x151   :  { %v391_v41 = vpop.eup %390  ;;  %v79_v47 = vmul.f32 %v389_v37, %v379_v24 }
 0x152   :  { %v393_v42 = vpop.eup %392  ;;  %v73_v43 = vsub.f32 %v41_v16, %v67_v38  ;;  %v69_v44 = vmul.f32 0.6931472, %v391_v41  ;;  %v85_v45 = vmul.f32 %v84_v40, %v77_v39 }
 0x153   :  { %v395_v46 = vpop.eup %394  ;;  %v81_v53 = vmul.f32 %v393_v42, %v377_v21 }
 0x154   :  { %v397_v48 = vpop.eup %396  ;;  %v74_v49 = vsub.f32 %v42_v11, %v69_v44  ;;  %v71_v50 = vmul.f32 0.6931472, %v395_v46  ;;  %v86_v51 = vsel %vm27_vm0, %v85_v45, 0.0  ;;  %v99_v52 = vsub.f32 %v73_v43, %v468_v35 }
 0x155   :  { %87 = vadd.xlane.f32.xlu0 %v86_v51  ;;  %v144_v57 = vsub.f32 %v468_v35, %v73_v43  ;;  %v83_v58 = vmul.f32 %v397_v48, %v381_v25  ;;  %v159_v62 = vsub.f32 %v73_v43, %v73_v43 }
 0x156   :  { %v75_v54 = vsub.f32 %v43_v17, %v71_v50  ;;  %v100_v55 = vmul.f32 %v99_v52, %v79_v47  ;;  %v114_v56 = vsub.f32 %v74_v49, %v468_v35  ;;  %v174_v2 = vsub.f32 %v74_v49, %v73_v43 }
 0x157   :  { %v145_v1 = vmul.f32 %v144_v57, %v77_v39  ;;  %v160_v4 = vmul.f32 %v159_v62, %v79_v47  ;;  %v204_v8 = vsub.f32 %v468_v35, %v74_v49  ;;  %v219_v11 = vsub.f32 %v73_v43, %v74_v49 }
 0x158   :  { %v101_v59 = vsel %vm27_vm0, %v100_v55, 0.0  ;;  %v115_v60 = vmul.f32 %v114_v56, %v81_v53  ;;  %v129_v61 = vsub.f32 %v75_v54, %v468_v35  ;;  %v189_v5 = vsub.f32 %v75_v54, %v73_v43 }
 0x159   :  { %102 = vadd.xlane.f32.xlu1 %v101_v59  ;;  %v146_v6 = vsel %vm27_vm0, %v145_v1, 0.0  ;;  %v175_v7 = vmul.f32 %v174_v2, %v81_v53  ;;  %v161_v9 = vsel %vm27_vm0, %v160_v4, 0.0  ;;  %v205_v13 = vmul.f32 %v204_v8, %v77_v39 }
 0x15a   :  { %v116_v63 = vsel %vm27_vm0, %v115_v60, 0.0  ;;  %v130_v0 = vmul.f32 %v129_v61, %v83_v58  ;;  %v190_v10 = vmul.f32 %v189_v5, %v83_v58  ;;  %v234_v14 = vsub.f32 %v74_v49, %v74_v49 }
 0x15b   :  { %117 = vadd.xlane.f32.xlu0 %v116_v63  ;;  %v176_v12 = vsel %vm27_vm0, %v175_v7, 0.0  ;;  %v220_v16 = vmul.f32 %v219_v11, %v79_v47  ;;  %v249_v17 = vsub.f32 %v75_v54, %v74_v49  ;;  %v206_v18 = vsel %vm27_vm0, %v205_v13, 0.0 }
 0x15c   :  { %v131_v3 = vsel %vm27_vm0, %v130_v0, 0.0  ;;  %v191_v15 = vsel %vm27_vm0, %v190_v10, 0.0  ;;  %v235_v19 = vmul.f32 %v234_v14, %v81_v53  ;;  %v264_v20 = vsub.f32 %v468_v35, %v75_v54 }
 0x15d   :  { %132 = vadd.xlane.f32.xlu1 %v131_v3  ;;  %v221_v21 = vsel %vm27_vm0, %v220_v16, 0.0  ;;  %v250_v22 = vmul.f32 %v249_v17, %v83_v58  ;;  %v279_v23 = vsub.f32 %v73_v43, %v75_v54  ;;  %v294_v26 = vsub.f32 %v74_v49, %v75_v54 }
 0x15e   :  { %v236_v24 = vsel %vm27_vm0, %v235_v19, 0.0  ;;  %v265_v25 = vmul.f32 %v264_v20, %v77_v39  ;;  %v309_v29 = vsub.f32 %v75_v54, %v75_v54 }
 0x15f   :  { %147 = vadd.xlane.f32.xlu0 %v146_v6  ;;  %v251_v27 = vsel %vm27_vm0, %v250_v22, 0.0  ;;  %v280_v28 = vmul.f32 %v279_v23, %v79_v47  ;;  %v295_v31 = vmul.f32 %v294_v26, %v81_v53 }
 0x160   :  { %v266_v30 = vsel %vm27_vm0, %v265_v25, 0.0  ;;  %v310_v33 = vmul.f32 %v309_v29, %v83_v58 }
 0x161   :  { %162 = vadd.xlane.f32.xlu1 %v161_v9  ;;  %v281_v32 = vsel %vm27_vm0, %v280_v28, 0.0  ;;  %v296_v34 = vsel %vm27_vm0, %v295_v31, 0.0 }
 0x162   :  { %v311_v35 = vsel %vm27_vm0, %v310_v33, 0.0 }
 0x163   :  { %177 = vadd.xlane.f32.xlu0 %v176_v12 }
 0x165   :  { %192 = vadd.xlane.f32.xlu1 %v191_v15 }
 0x167   :  { %207 = vadd.xlane.f32.xlu0 %v206_v18 }
 0x169   :  { %222 = vadd.xlane.f32.xlu1 %v221_v21 }
 0x16b   :  { %237 = vadd.xlane.f32.xlu0 %v236_v24 }
 0x16d   :  { %252 = vadd.xlane.f32.xlu1 %v251_v27 }
 0x16f   :  { %267 = vadd.xlane.f32.xlu0 %v266_v30 }
 0x171   :  { %282 = vadd.xlane.f32.xlu1 %v281_v32 }
 0x173   :  { %297 = vadd.xlane.f32.xlu0 %v296_v34 }
 0x175   :  { %312 = vadd.xlane.f32.xlu1 %v311_v35 }
 0x1e2   :  { %v88_v36 = vpop.xlane.xlu0 %87 }
 0x1e3   :  { %v89_v37 = vrot.slane %v88_v36, 4 }
 0x1e5   :  { %v90_v38 = vadd.f32 %v89_v37, %v88_v36 }
 0x1e6   :  { %v103_v39 = vpop.xlane.xlu1 %102 }
 0x1e7   :  { %v91_v40 = vrot.slane %v90_v38, 2  ;;  %v104_v41 = vrot.slane %v103_v39, 4 }
 0x1e8   :  { %v118_v42 = vpop.xlane.xlu0 %117 }
 0x1e9   :  { %v105_v43 = vadd.f32 %v104_v41, %v103_v39  ;;  %v119_v44 = vrot.slane %v118_v42, 4  ;;  %v92_v45 = vadd.f32 %v91_v40, %v90_v38 }
 0x1ea   :  { %v133_v46 = vpop.xlane.xlu1 %132 }
 0x1eb   :  { %v106_v47 = vrot.slane %v105_v43, 2  ;;  %v120_v48 = vadd.f32 %v119_v44, %v118_v42  ;;  %v134_v49 = vrot.slane %v133_v46, 4  ;;  %v93_v50 = vrot.slane %v92_v45, 1 }
 0x1ec   :  { %v148_v51 = vpop.xlane.xlu0 %147 }
 0x1ed   :  { %v121_v52 = vrot.slane %v120_v48, 2  ;;  %v135_v53 = vadd.f32 %v134_v49, %v133_v46  ;;  %v149_v54 = vrot.slane %v148_v51, 4  ;;  %v94_v55 = vadd.f32 %v93_v50, %v92_v45 }
 0x1ee   :  { %v163_v56 = vpop.xlane.xlu1 %162  ;;  %v107_v57 = vadd.f32 %v106_v47, %v105_v43 }
 0x1ef   :  { %v136_v58 = vrot.slane %v135_v53, 2  ;;  %v150_v59 = vadd.f32 %v149_v54, %v148_v51  ;;  %v164_v60 = vrot.slane %v163_v56, 4  ;;  %338 = vpush %v94_v55  ;;  %v122_v61 = vadd.f32 %v121_v52, %v120_v48 }
 0x1f0   :  { %v178_v62 = vpop.xlane.xlu0 %177  ;;  %v108_v63 = vrot.slane %v107_v57, 1 }
 0x1f1   :  { %v151_v0 = vrot.slane %v150_v59, 2  ;;  %v165_v1 = vadd.f32 %v164_v60, %v163_v56  ;;  %v179_v2 = vrot.slane %v178_v62, 4  ;;  %v123_v3 = vrot.slane %v122_v61, 1 }
 0x1f2   :  { %v193_v4 = vpop.xlane.xlu1 %192  ;;  %v109_v5 = vadd.f32 %v108_v63, %v107_v57  ;;  %v137_v6 = vadd.f32 %v136_v58, %v135_v53 }
 0x1f3   :  { %v166_v7 = vrot.slane %v165_v1, 2  ;;  %v180_v8 = vadd.f32 %v179_v2, %v178_v62  ;;  %v194_v9 = vrot.slane %v193_v4, 4  ;;  %v124_v10 = vadd.f32 %v123_v3, %v122_v61 }
 0x1f4   :  { %v208_v11 = vpop.xlane.xlu0 %207  ;;  %340 = vpush %v109_v5  ;;  %v138_v12 = vrot.slane %v137_v6, 1  ;;  %v152_v13 = vadd.f32 %v151_v0, %v150_v59 }
 0x1f5   :  { %v181_v14 = vrot.slane %v180_v8, 2  ;;  %v195_v15 = vadd.f32 %v194_v9, %v193_v4  ;;  %v209_v16 = vrot.slane %v208_v11, 4  ;;  %342 = vpush %v124_v10  ;;  %v167_v17 = vadd.f32 %v166_v7, %v165_v1 }
 0x1f6   :  { %v223_v18 = vpop.xlane.xlu1 %222  ;;  %v139_v19 = vadd.f32 %v138_v12, %v137_v6  ;;  %v153_v20 = vrot.slane %v152_v13, 1 }
 0x1f7   :  { %v196_v21 = vrot.slane %v195_v15, 2  ;;  %v210_v22 = vadd.f32 %v209_v16, %v208_v11  ;;  %v224_v23 = vrot.slane %v223_v18, 4  ;;  %v168_v24 = vrot.slane %v167_v17, 1 }
 0x1f8   :  { %v238_v25 = vpop.xlane.xlu0 %237  ;;  %344 = vpush %v139_v19  ;;  %v154_v26 = vadd.f32 %v153_v20, %v152_v13  ;;  %v182_v27 = vadd.f32 %v181_v14, %v180_v8 }
 0x1f9   :  { %v211_v28 = vrot.slane %v210_v22, 2  ;;  %v225_v29 = vadd.f32 %v224_v23, %v223_v18  ;;  %v239_v30 = vrot.slane %v238_v25, 4  ;;  %v169_v31 = vadd.f32 %v168_v24, %v167_v17 }
 0x1fa   :  { %346 = vpush %v154_v26  ;;  %v253_v32 = vpop.xlane.xlu1 %252  ;;  %v183_v33 = vrot.slane %v182_v27, 1  ;;  %v197_v34 = vadd.f32 %v196_v21, %v195_v15 }
 0x1fb   :  { %v226_v35 = vrot.slane %v225_v29, 2  ;;  %v240_v36 = vadd.f32 %v239_v30, %v238_v25  ;;  %v254_v37 = vrot.slane %v253_v32, 4  ;;  %348 = vpush %v169_v31  ;;  %v212_v38 = vadd.f32 %v211_v28, %v210_v22 }
 0x1fc   :  { %v268_v39 = vpop.xlane.xlu0 %267  ;;  %v184_v40 = vadd.f32 %v183_v33, %v182_v27  ;;  %v198_v41 = vrot.slane %v197_v34, 1 }
 0x1fd   :  { %v241_v42 = vrot.slane %v240_v36, 2  ;;  %v255_v43 = vadd.f32 %v254_v37, %v253_v32  ;;  %v269_v44 = vrot.slane %v268_v39, 4  ;;  %v213_v45 = vrot.slane %v212_v38, 1 }
 0x1fe   :  { %350 = vpush %v184_v40  ;;  %v283_v46 = vpop.xlane.xlu1 %282  ;;  %v199_v47 = vadd.f32 %v198_v41, %v197_v34  ;;  %v227_v48 = vadd.f32 %v226_v35, %v225_v29 }
 0x1ff   :  { %v256_v49 = vrot.slane %v255_v43, 2  ;;  %v270_v50 = vadd.f32 %v269_v44, %v268_v39  ;;  %v284_v51 = vrot.slane %v283_v46, 4  ;;  %v214_v52 = vadd.f32 %v213_v45, %v212_v38 }
 0x200   :  { %v298_v53 = vpop.xlane.xlu0 %297  ;;  %352 = vpush %v199_v47  ;;  %v228_v54 = vrot.slane %v227_v48, 1  ;;  %v242_v55 = vadd.f32 %v241_v42, %v240_v36 }
 0x201   :  { %v271_v56 = vrot.slane %v270_v50, 2  ;;  %v285_v57 = vadd.f32 %v284_v51, %v283_v46  ;;  %v299_v58 = vrot.slane %v298_v53, 4  ;;  %354 = vpush %v214_v52  ;;  %v257_v59 = vadd.f32 %v256_v49, %v255_v43 }
 0x202   :  { %v313_v60 = vpop.xlane.xlu1 %312  ;;  %v229_v61 = vadd.f32 %v228_v54, %v227_v48  ;;  %v243_v62 = vrot.slane %v242_v55, 1 }
 0x203   :  { %v286_v63 = vrot.slane %v285_v57, 2  ;;  %v300_v0 = vadd.f32 %v299_v58, %v298_v53  ;;  %v314_v1 = vrot.slane %v313_v60, 4  ;;  %v258_v2 = vrot.slane %v257_v59, 1 }
 0x204   :  { %356 = vpush %v229_v61  ;;  %v244_v3 = vadd.f32 %v243_v62, %v242_v55  ;;  %v272_v4 = vadd.f32 %v271_v56, %v270_v50 }
 0x205   :  { %v301_v5 = vrot.slane %v300_v0, 2  ;;  %v315_v6 = vadd.f32 %v314_v1, %v313_v60  ;;  %v259_v7 = vadd.f32 %v258_v2, %v257_v59  ;;  %v287_v8 = vadd.f32 %v286_v63, %v285_v57 }
 0x206   :  { %358 = vpush %v244_v3  ;;  %v273_v9 = vrot.slane %v272_v4, 1 }
 0x207   :  { %v302_v10 = vadd.f32 %v301_v5, %v300_v0  ;;  %v316_v11 = vrot.slane %v315_v6, 2  ;;  %360 = vpush %v259_v7  ;;  %v288_v12 = vrot.slane %v287_v8, 1 }
 0x208   :  { %v274_v13 = vadd.f32 %v273_v9, %v272_v4 }
 0x209   :  { %v317_v14 = vadd.f32 %v316_v11, %v315_v6  ;;  %v289_v15 = vadd.f32 %v288_v12, %v287_v8  ;;  %v303_v16 = vrot.slane %v302_v10, 1 }
 0x20a   :  { %362 = vpush %v274_v13 }
 0x20b   :  { %364 = vpush %v289_v15  ;;  %v304_v17 = vadd.f32 %v303_v16, %v302_v10  ;;  %v318_v18 = vrot.slane %v317_v14, 1 }
 0x20d   :  { %366 = vpush %v304_v17  ;;  %v319_v19 = vadd.f32 %v318_v18, %v317_v14 }
 0x20f   :  { %368 = vpush %v319_v19 }
 0x220   :  { %s339_s0 = spop %338 }
 0x221   :  { %s96_s20 = smul.f32 0.015625, %s339_s0 }
 0x223   :  { %98 = sst [smem:[#allocation5]] %s96_s20 }
 0x225   :  { %s341_s21 = spop %340 }
 0x226   :  { %s111_s22 = smul.f32 0.015625, %s341_s21  ;;  %s343_s23 = spop %342 }
 0x227   :  { %s126_s24 = smul.f32 0.015625, %s343_s23  ;;  %s420_s23 = scalar_lea.hbm %s507_s1, 64 }
 0x228   :  { %113 = sst [smem:[#allocation5 + $0x1]] %s111_s22  ;;  %p421_p8 = scmp.ne.s32.totalorder %s507_s1, %s420_s23 }
 0x229   :  { %128 = sst [smem:[#allocation5 + $0x2]] %s126_s24  ;;  %s345_s25 = spop %344 }
 0x22a   :  { %s141_s26 = smul.f32 0.015625, %s345_s25  ;;  %p424_p9 = scmp.lt.u32.totalorder %s420_s23, %s507_s1 }
 0x22b   :  { %s347_s27 = spop %346 }
 0x22c   :  { %143 = sst [smem:[#allocation5 + $0x3]] %s141_s26  ;;  %s156_s28 = smul.f32 0.015625, %s347_s27 }
 0x22d   :  { %s349_s29 = spop %348  ;;  %p426_p10 = pnand %p424_p9, %p421_p8 }
 0x22e   :  { %158 = sst [smem:[#allocation5 + $0x80]] %s156_s28  ;;  %s171_s30 = smul.f32 0.015625, %s349_s29 }
 0x22f   :  { %s351_s2 = spop %350 }
 0x230   :  { %173 = sst [smem:[#allocation5 + $0x81]] %s171_s30  ;;  %s186_s3 = smul.f32 0.015625, %s351_s2 }
 0x231   :  { %s353_s4 = spop %352 }
 0x232   :  { %188 = sst [smem:[#allocation5 + $0x82]] %s186_s3  ;;  %s201_s5 = smul.f32 0.015625, %s353_s4 }
 0x233   :  { %s355_s6 = spop %354 }
 0x234   :  { %203 = sst [smem:[#allocation5 + $0x83]] %s201_s5  ;;  %s216_s7 = smul.f32 0.015625, %s355_s6 }
 0x235   :  { %s357_s8 = spop %356 }
 0x236   :  { %218 = sst [smem:[#allocation5 + $0x100]] %s216_s7  ;;  %s231_s9 = smul.f32 0.015625, %s357_s8 }
 0x237   :  { %s359_s10 = spop %358 }
 0x238   :  { %233 = sst [smem:[#allocation5 + $0x101]] %s231_s9  ;;  %s246_s11 = smul.f32 0.015625, %s359_s10 }
 0x239   :  { %s361_s12 = spop %360 }
 0x23a   :  { %248 = sst [smem:[#allocation5 + $0x102]] %s246_s11  ;;  %s261_s13 = smul.f32 0.015625, %s361_s12 }
 0x23b   :  { %s363_s14 = spop %362 }
 0x23c   :  { %263 = sst [smem:[#allocation5 + $0x103]] %s261_s13  ;;  %s276_s15 = smul.f32 0.015625, %s363_s14 }
 0x23d   :  { %s365_s16 = spop %364 }
 0x23e   :  { %278 = sst [smem:[#allocation5 + $0x180]] %s276_s15  ;;  %s291_s17 = smul.f32 0.015625, %s365_s16 }
 0x23f   :  { %s367_s18 = spop %366 }
 0x240   :  { %293 = sst [smem:[#allocation5 + $0x181]] %s291_s17  ;;  %s306_s19 = smul.f32 0.015625, %s367_s18 }
 0x241   :  { %s369_s0 = spop %368 }
 0x242   :  { %308 = sst [smem:[#allocation5 + $0x182]] %s306_s19  ;;  %s321_s20 = smul.f32 0.015625, %s369_s0 }
 0x244   :  { %323 = sst [smem:[#allocation5 + $0x183]] %s321_s20 }
 0x245   :  { %429 = shalt.err (!%p426_p10)
}
 0x246   :  { %s437_s28 = smov [#allocation5]  }
 0x247   :  { %331 = dma.smem_to_hbm %s437_s28, 64, %s507_s1, [#allocation4]  }
 0x248   :  { %432 = dma.done.wait [#allocation4], 64  }
 0x249   :  { %433 = vsyncadd [#allocation4], 4294967232 }
 0x24a   :  { %335 = sfence }
 0x24b   :  { %336 = vsyncpa [#allocation3], 1 }
 0x24c   :  { %337 = vsyncpa [#allocation4], 1 }

</bundles_post_ra>
